<compile_context>
chip_gen: v5e
topology: v5e:2x2
jax: 0.10.0
libtpu: 0.0.40
codegen_flags: <defaults>
</compile_context>

<pallas_src>
import functools

import jax
import jax.numpy as jnp
from jax.experimental import pallas as pl
from jax.experimental.pallas import tpu as pltpu


def _actor_kernel(s_ref, g_ref, w1s_ref, w1g_ref, b1_ref, w2_ref, b2_ref,
                  w3_ref, b3_ref, out_ref, *, max_action):
    """One batch tile of the fused 3-layer MLP."""
    # Layer 1 without materializing concat([state, goal]):
    #   x @ W1 == state @ W1[:state_dim] + goal @ W1[state_dim:]
    h1 = jnp.dot(s_ref[...], w1s_ref[...], preferred_element_type=jnp.float32)
    h1 = h1 + jnp.dot(g_ref[...], w1g_ref[...], preferred_element_type=jnp.float32)
    h1 = jnp.maximum(h1 + b1_ref[...], 0.0)

    h2 = jnp.dot(h1, w2_ref[...], preferred_element_type=jnp.float32) + b2_ref[...]
    h2 = jnp.maximum(h2, 0.0)

    a = jnp.dot(h2, w3_ref[...], preferred_element_type=jnp.float32) + b3_ref[...]
    out_ref[...] = (max_action * jnp.tanh(a)).astype(out_ref.dtype)


def _round_up(x, m):
    return ((x + m - 1) // m) * m


def actor_forward(state, goal, params, max_action, *, block_batch=1024):
    """Pallas wrapper. state: [B, state_dim], goal: [B, goal_dim] -> [B, action_dim]."""
    w1, b1, w2, b2, w3, b3 = params
    if state.dtype != jnp.float32:
        state = state.astype(jnp.float32)
    if goal.dtype != jnp.float32:
        goal = goal.astype(jnp.float32)

    batch = state.shape[0]
    state_dim = state.shape[1]
    goal_dim = goal.shape[1]
    action_dim = w3.shape[1]

    # Split the first-layer weight once (tiny slices on the weight, not the batch).
    w1s = w1[:state_dim]
    w1g = w1[state_dim:]

    # Batch tile: multiple of 8 (sublanes), large to amortize ~0.35 us/step overhead.
    tb = min(block_batch, _round_up(batch, 8))
    padded = _round_up(batch, tb)
    if padded != batch:
        pad = padded - batch
        state = jnp.pad(state, ((0, pad), (0, 0)))
        goal = jnp.pad(goal, ((0, pad), (0, 0)))

    grid = (padded // tb,)

    def row_spec(d):
        return pl.BlockSpec((tb, d), lambda i: (i, 0))

    def resident(arr):
        # Whole array, same block index every step -> stays resident in VMEM.
        return pl.BlockSpec(arr.shape, lambda i: (0,) * arr.ndim)

    kernel = functools.partial(_actor_kernel, max_action=float(max_action))
    out = pl.pallas_call(
        kernel,
        out_shape=jax.ShapeDtypeStruct((padded, action_dim), jnp.float32),
        grid=grid,
        in_specs=[row_spec(state_dim), row_spec(goal_dim),
                  resident(w1s), resident(w1g), resident(b1),
                  resident(w2), resident(b2), resident(w3), resident(b3)],
        out_specs=pl.BlockSpec((tb, action_dim), lambda i: (i, 0)),
        compiler_params=pltpu.CompilerParams(
            dimension_semantics=("parallel",)),
    )(state, goal, w1s, w1g, b1, w2, b2, w3, b3)

    return out if padded == batch else out[:batch]


def init_actor_params(key, state_dim, goal_dim, action_dim, hidden_sizes=(256, 256)):
    """PyTorch-Linear-style init (uniform +-1/sqrt(fan_in)); weights stored as [in, out]."""
    dims = [state_dim + goal_dim, hidden_sizes[0], hidden_sizes[1], action_dim]
    params = []
    for i in range(3):
        key, kw, kb = jax.random.split(key, 3)
        fan_in, fan_out = dims[i], dims[i + 1]
        bound = 1.0 / (fan_in ** 0.5)
        w = jax.random.uniform(kw, (fan_in, fan_out), jnp.float32, -bound, bound)
        b = jax.random.uniform(kb, (1, fan_out), jnp.float32, -bound, bound)
        params += [w, b]
    return tuple(params)


def actor_reference(state, goal, params, max_action):
    """Pure-JAX reference (mirrors the PyTorch forward)."""
    w1, b1, w2, b2, w3, b3 = params
    x = jnp.concatenate([state, goal], axis=1)
    a = jnp.maximum(x @ w1 + b1, 0.0)
    a = jnp.maximum(a @ w2 + b2, 0.0)
    return max_action * jnp.tanh(a @ w3 + b3)


if __name__ == "__main__":
    key = jax.random.PRNGKey(0)
    state_dim, goal_dim, action_dim = 16, 8, 4
    max_action = 2.0

    # --- Test 1: small shapes (batch=2, hidden=32), single tile of 8 padded rows ---
    batch, hidden_sizes = 2, (32, 32)
    key, ks, kg, kp = jax.random.split(key, 4)
    state = jax.random.normal(ks, (batch, state_dim), jnp.float32)
    goal = jax.random.normal(kg, (batch, goal_dim), jnp.float32)
    params = init_actor_params(kp, state_dim, goal_dim, action_dim, hidden_sizes)

    out = jax.block_until_ready(actor_forward(state, goal, params, max_action))
    ref = actor_reference(state, goal, params, max_action)
    assert out.shape == (batch, action_dim)
    assert jnp.allclose(out, ref, atol=1e-4, rtol=1e-4), "mismatch vs reference (test 1)"

    # --- Test 2: module-default hidden widths, multi-tile batch grid with padding ---
    batch2, hidden2 = 200, (256, 256)
    key, ks2, kg2, kp2 = jax.random.split(key, 4)
    state2 = jax.random.normal(ks2, (batch2, state_dim), jnp.float32)
    goal2 = jax.random.normal(kg2, (batch2, goal_dim), jnp.float32)
    params2 = init_actor_params(kp2, state_dim, goal_dim, action_dim, hidden2)

    out2 = jax.block_until_ready(
        actor_forward(state2, goal2, params2, max_action, block_batch=64))
    ref2 = actor_reference(state2, goal2, params2, max_action)
    assert out2.shape == (batch2, action_dim)
    assert jnp.allclose(out2, ref2, atol=2e-3, rtol=2e-3), "mismatch vs reference (test 2)"

    print("KERNEL_OK")
</pallas_src>

<mosaic_0001>
module attributes {stable_mosaic.version = 11 : i64} {
  func.func @_actor_kernel(%arg0: i32, %arg1: memref<8x16xf32, #tpu.memory_space<vmem>>, %arg2: memref<8x8xf32, #tpu.memory_space<vmem>>, %arg3: memref<16x32xf32, #tpu.memory_space<vmem>>, %arg4: memref<8x32xf32, #tpu.memory_space<vmem>>, %arg5: memref<1x32xf32, #tpu.memory_space<vmem>>, %arg6: memref<32x32xf32, #tpu.memory_space<vmem>>, %arg7: memref<1x32xf32, #tpu.memory_space<vmem>>, %arg8: memref<32x4xf32, #tpu.memory_space<vmem>>, %arg9: memref<1x4xf32, #tpu.memory_space<vmem>>, %arg10: memref<8x4xf32, #tpu.memory_space<vmem>>) attributes {dimension_semantics = [#tpu.dimension_semantics<parallel>], iteration_bounds = array<i64: 1>, scalar_prefetch = 0 : i64, scratch_operands = 0 : i64, tpu.core_type = #tpu.core_type<tc>, window_params = [{transform_indices = @transform_0, window_bounds = array<i64: 8, 16>}, {transform_indices = @transform_1, window_bounds = array<i64: 8, 8>}, {pipeline_mode = #tpu.pipeline_mode<synchronous>, transform_indices = @transform_2, window_bounds = array<i64: 16, 32>}, {pipeline_mode = #tpu.pipeline_mode<synchronous>, transform_indices = @transform_3, window_bounds = array<i64: 8, 32>}, {pipeline_mode = #tpu.pipeline_mode<synchronous>, transform_indices = @transform_4, window_bounds = array<i64: 1, 32>}, {pipeline_mode = #tpu.pipeline_mode<synchronous>, transform_indices = @transform_5, window_bounds = array<i64: 32, 32>}, {pipeline_mode = #tpu.pipeline_mode<synchronous>, transform_indices = @transform_6, window_bounds = array<i64: 1, 32>}, {pipeline_mode = #tpu.pipeline_mode<synchronous>, transform_indices = @transform_7, window_bounds = array<i64: 32, 4>}, {pipeline_mode = #tpu.pipeline_mode<synchronous>, transform_indices = @transform_8, window_bounds = array<i64: 1, 4>}, {transform_indices = @transform_9, window_bounds = array<i64: 8, 4>}]} {
    %c0 = arith.constant 0 : index
    %c0_0 = arith.constant 0 : index
    %0 = vector.load %arg1[%c0, %c0_0] : memref<8x16xf32, #tpu.memory_space<vmem>>, vector<8x16xf32>
    %c0_1 = arith.constant 0 : index
    %c0_2 = arith.constant 0 : index
    %1 = vector.load %arg3[%c0_1, %c0_2] : memref<16x32xf32, #tpu.memory_space<vmem>>, vector<16x32xf32>
    %cst = arith.constant dense<0.000000e+00> : vector<8x32xf32>
    %2 = tpu.matmul %0, %1, %cst {dimension_numbers = #tpu.dot_dimension_numbers<[1], [0], [0], [1], [0, 0, 1, 1], [], []>} : vector<8x16xf32>, vector<16x32xf32>, vector<8x32xf32> -> vector<8x32xf32>
    %c0_3 = arith.constant 0 : index
    %c0_4 = arith.constant 0 : index
    %3 = vector.load %arg2[%c0_3, %c0_4] : memref<8x8xf32, #tpu.memory_space<vmem>>, vector<8x8xf32>
    %c0_5 = arith.constant 0 : index
    %c0_6 = arith.constant 0 : index
    %4 = vector.load %arg4[%c0_5, %c0_6] : memref<8x32xf32, #tpu.memory_space<vmem>>, vector<8x32xf32>
    %cst_7 = arith.constant dense<0.000000e+00> : vector<8x32xf32>
    %5 = tpu.matmul %3, %4, %cst_7 {dimension_numbers = #tpu.dot_dimension_numbers<[1], [0], [0], [1], [0, 0, 1, 1], [], []>} : vector<8x8xf32>, vector<8x32xf32>, vector<8x32xf32> -> vector<8x32xf32>
    %6 = arith.addf %2, %5 : vector<8x32xf32>
    %c0_8 = arith.constant 0 : index
    %c0_9 = arith.constant 0 : index
    %7 = vector.load %arg5[%c0_8, %c0_9] : memref<1x32xf32, #tpu.memory_space<vmem>>, vector<1x32xf32>
    %8 = vector.broadcast %7 : vector<1x32xf32> to vector<8x32xf32>
    %9 = arith.addf %6, %8 : vector<8x32xf32>
    %cst_10 = arith.constant 0.000000e+00 : f32
    %10 = vector.broadcast %cst_10 : f32 to vector<8x32xf32>
    %11 = arith.maximumf %9, %10 : vector<8x32xf32>
    %c0_11 = arith.constant 0 : index
    %c0_12 = arith.constant 0 : index
    %12 = vector.load %arg6[%c0_11, %c0_12] : memref<32x32xf32, #tpu.memory_space<vmem>>, vector<32x32xf32>
    %cst_13 = arith.constant dense<0.000000e+00> : vector<8x32xf32>
    %13 = tpu.matmul %11, %12, %cst_13 {dimension_numbers = #tpu.dot_dimension_numbers<[1], [0], [0], [1], [0, 0, 1, 1], [], []>} : vector<8x32xf32>, vector<32x32xf32>, vector<8x32xf32> -> vector<8x32xf32>
    %c0_14 = arith.constant 0 : index
    %c0_15 = arith.constant 0 : index
    %14 = vector.load %arg7[%c0_14, %c0_15] : memref<1x32xf32, #tpu.memory_space<vmem>>, vector<1x32xf32>
    %15 = vector.broadcast %14 : vector<1x32xf32> to vector<8x32xf32>
    %16 = arith.addf %13, %15 : vector<8x32xf32>
    %cst_16 = arith.constant 0.000000e+00 : f32
    %17 = vector.broadcast %cst_16 : f32 to vector<8x32xf32>
    %18 = arith.maximumf %16, %17 : vector<8x32xf32>
    %c0_17 = arith.constant 0 : index
    %c0_18 = arith.constant 0 : index
    %19 = vector.load %arg8[%c0_17, %c0_18] : memref<32x4xf32, #tpu.memory_space<vmem>>, vector<32x4xf32>
    %cst_19 = arith.constant dense<0.000000e+00> : vector<8x4xf32>
    %20 = tpu.matmul %18, %19, %cst_19 {dimension_numbers = #tpu.dot_dimension_numbers<[1], [0], [0], [1], [0, 0, 1, 1], [], []>} : vector<8x32xf32>, vector<32x4xf32>, vector<8x4xf32> -> vector<8x4xf32>
    %c0_20 = arith.constant 0 : index
    %c0_21 = arith.constant 0 : index
    %21 = vector.load %arg9[%c0_20, %c0_21] : memref<1x4xf32, #tpu.memory_space<vmem>>, vector<1x4xf32>
    %22 = vector.broadcast %21 : vector<1x4xf32> to vector<8x4xf32>
    %23 = arith.addf %20, %22 : vector<8x4xf32>
    %24 = math.tanh %23 : vector<8x4xf32>
    %cst_22 = arith.constant 2.000000e+00 : f32
    %25 = vector.broadcast %cst_22 : f32 to vector<8x4xf32>
    %26 = arith.mulf %25, %24 : vector<8x4xf32>
    %c0_23 = arith.constant 0 : index
    %c0_24 = arith.constant 0 : index
    %27 = vector.load %arg10[%c0_23, %c0_24] : memref<8x4xf32, #tpu.memory_space<vmem>>, vector<8x4xf32>
    tpu.vector_store %arg10[%c0_23, %c0_24], %26 {strides = array<i32>} : memref<8x4xf32, #tpu.memory_space<vmem>>, vector<8x4xf32>,
    return
  }
  func.func @transform_0(%arg0: i32) -> (i32, i32) {
    %c0_i32 = arith.constant 0 : i32
    %c0_i32_0 = arith.constant 0 : i32
    return %arg0, %c0_i32 : i32, i32
  }
  func.func @transform_1(%arg0: i32) -> (i32, i32) {
    %c0_i32 = arith.constant 0 : i32
    %c0_i32_0 = arith.constant 0 : i32
    return %arg0, %c0_i32 : i32, i32
  }
  func.func @transform_2(%arg0: i32) -> (i32, i32) {
    %c0_i32 = arith.constant 0 : i32
    %c0_i32_0 = arith.constant 0 : i32
    %c0_i32_1 = arith.constant 0 : i32
    return %c0_i32, %c0_i32_0 : i32, i32
  }
  func.func @transform_3(%arg0: i32) -> (i32, i32) {
    %c0_i32 = arith.constant 0 : i32
    %c0_i32_0 = arith.constant 0 : i32
    %c0_i32_1 = arith.constant 0 : i32
    return %c0_i32, %c0_i32_0 : i32, i32
  }
  func.func @transform_4(%arg0: i32) -> (i32, i32) {
    %c0_i32 = arith.constant 0 : i32
    %c0_i32_0 = arith.constant 0 : i32
    %c0_i32_1 = arith.constant 0 : i32
    return %c0_i32, %c0_i32_0 : i32, i32
  }
  func.func @transform_5(%arg0: i32) -> (i32, i32) {
    %c0_i32 = arith.constant 0 : i32
    %c0_i32_0 = arith.constant 0 : i32
    %c0_i32_1 = arith.constant 0 : i32
    return %c0_i32, %c0_i32_0 : i32, i32
  }
  func.func @transform_6(%arg0: i32) -> (i32, i32) {
    %c0_i32 = arith.constant 0 : i32
    %c0_i32_0 = arith.constant 0 : i32
    %c0_i32_1 = arith.constant 0 : i32
    return %c0_i32, %c0_i32_0 : i32, i32
  }
  func.func @transform_7(%arg0: i32) -> (i32, i32) {
    %c0_i32 = arith.constant 0 : i32
    %c0_i32_0 = arith.constant 0 : i32
    %c0_i32_1 = arith.constant 0 : i32
    return %c0_i32, %c0_i32_0 : i32, i32
  }
  func.func @transform_8(%arg0: i32) -> (i32, i32) {
    %c0_i32 = arith.constant 0 : i32
    %c0_i32_0 = arith.constant 0 : i32
    %c0_i32_1 = arith.constant 0 : i32
    return %c0_i32, %c0_i32_0 : i32, i32
  }
  func.func @transform_9(%arg0: i32) -> (i32, i32) {
    %c0_i32 = arith.constant 0 : i32
    %c0_i32_0 = arith.constant 0 : i32
    return %arg0, %c0_i32 : i32, i32
  }
}

</mosaic_0001>

<bundles_post_ra>
// kernel: tpu_custom_call.1
= control target key start
LH: loop header
LB: loop body
LE: loop exit
PB: predicated region body
PF: predicated region fallthrough
CT: control target
= control target key end

     0   :  { %14 = vsyncpa [#allocation3], 0  ;;  %s444_s0 = inlined_call_operand.hbm [shape: f32[8,16], index: 0, kind: input, shape index: {}]   ;;  %s445_s1 = inlined_call_operand.hbm [shape: f32[8,8], index: 1, kind: input, shape index: {}]   ;;  %s446_s2 = inlined_call_operand.hbm [shape: f32[16,32], index: 2, kind: input, shape index: {}]   ;;  %s447_s3 = inlined_call_operand.hbm [shape: f32[8,32], index: 3, kind: input, shape index: {}]   ;;  %s448_s4 = inlined_call_operand.vmem [shape: f32[1,32], index: 4, kind: input, shape index: {}]   ;;  %s449_s5 = inlined_call_operand.vmem [shape: f32[32,32], index: 5, kind: input, shape index: {}]   ;;  %s450_s6 = inlined_call_operand.vmem [shape: f32[1,32], index: 6, kind: input, shape index: {}]   ;;  %s451_s7 = inlined_call_operand.vmem [shape: f32[32,4], index: 7, kind: input, shape index: {}]   ;;  %s452_s8 = inlined_call_operand.vmem [shape: f32[1,4], index: 8, kind: input, shape index: {}]   ;;  %s453_s9 = inlined_call_operand.vmem [shape: f32[8,4], index: 9, kind: output, shape index: {}]  }
   0x1   :  { %15 = vsyncpa [#allocation5], 0  ;;  %s33_s11 = sshll.u32 %s445_s1, 4  ;;  %s34_s11 = int_to_ptr.hbm [resolvable:$true] %s33_s11 }
   0x2   :  { %16 = vsyncpa [#allocation8], 0  ;;  %s340_s12 = smov [#allocation4]   ;;  %s22_s16 = sshll.u32 %s444_s0, 4  ;;  %s23_s16 = int_to_ptr.hbm [resolvable:$true] %s22_s16 }
   0x3   :  { %s35_s13 = sshll.u32 %s340_s12, 4  ;;  %s341_s17 = smov [#allocation2]   ;;  %s36_s13 = int_to_ptr.vmem [resolvable:$true] %s35_s13 }
   0x4   :  { %38 = dma.hbm_to_vmem [thread:$0]  %s34_s11, 128, %s36_s13, [#allocation5]  }
   0x5   :  { %s24_s18 = sshll.u32 %s341_s17, 4  ;;  %s43_s21 = sshll.u32 %s446_s2, 4  ;;  %s25_s18 = int_to_ptr.vmem [resolvable:$true] %s24_s18  ;;  %s44_s21 = int_to_ptr.hbm [resolvable:$true] %s43_s21 }
   0x6   :  { %27 = dma.hbm_to_vmem [thread:$0]  %s23_s16, 128, %s25_s18, [#allocation3]  }
   0x7   :  { %s342_s1 = smov [#allocation6]   ;;  %s57_s25 = sshll.u32 %s447_s3, 4  ;;  %s58_s25 = int_to_ptr.hbm [resolvable:$true] %s57_s25 }
   0x8   :  { %s45_s22 = sshll.u32 %s342_s1, 4  ;;  %s343_s26 = smov 128   ;;  %s46_s22 = int_to_ptr.vmem [resolvable:$true] %s45_s22 }
   0x9   :  { %s344_s0 = smov 8   ;;  %s345_s27 = smov [#allocation7]  }
   0xa   :  { %51 = dma.hbm_to_vmem [thread:$0]  %s44_s21, 256, %s46_s22, [#allocation5], %s343_s26, %s343_s26, %s344_s0  }
   0xb   :  { %s59_s28 = sshll.u32 %s345_s27, 4  ;;  %s60_s28 = int_to_ptr.vmem [resolvable:$true] %s59_s28 }
   0xc   :  { %62 = dma.hbm_to_vmem [thread:$0]  %s58_s25, 128, %s60_s28, [#allocation8]  }
   0xd   :  { %334 = dma.done.wait [#allocation3], 128  }
   0xe   :  { %335 = vsyncadd [#allocation3], 4294967168 }
   0xf   :  { %336 = dma.done.wait [#allocation5], 384  }
  0x10   :  { %337 = vsyncadd [#allocation5], 4294966912 }
  0x11   :  { %338 = dma.done.wait [#allocation8], 128  }
  0x12   :  { %339 = vsyncadd [#allocation8], 4294967168  ;;  %vm94_vm0 = vcmask 64512   ;;  %v91_v0 = vld [vmem:[#allocation6 + $0x8] sm:$0xff]  ;;  %v93_v1 = vld [vmem:[#allocation7] sm:$0xff]  ;;  %vm118_vm1 = vcmask 130048  }
  0x13   :  { %v90_v2 = vld [vmem:[#allocation6] sm:$0xff]  ;;  %136 = vmatpush.msra.mxu1 %v91_v0  ;;  %113 = vmatpush.msra.mxu0 %v93_v1  ;;  %v92_v3 = vld [vmem:[#allocation4] sm:$0xff]  ;;  %v89_v4 = vld [vmem:[#allocation2] sm:$0xff]  ;;  %vm156_vm2 = vcmask 261120   ;;  %vm214_vm3 = vcmask 31744  }
  0x14   :  { %223 = vmatmul.msk.f32.vlgmr.msra.gmra.mxu0 %vm94_vm0, %v92_v3  ;;  %v151_v5 = vld [vmem:[%s449_s5 + $0x18] sm:$0xff]  ;;  %v150_v6 = vld [vmem:[%s449_s5 + $0x10] sm:$0xff]  ;;  %v149_v7 = vld [vmem:[%s449_s5 + $0x8] sm:$0xff] }
  0x15   :  { %137 = vmatpush.msra.mxu1 %v90_v2  ;;  %172 = vmatpush.msra.mxu2 %v151_v5  ;;  %v148_v8 = vld [vmem:[%s449_s5] sm:$0xff]  ;;  %v184_v9 = vld [vmem:[%s451_s7 + $0x18] sm:$0xff]  ;;  %v183_v16 = vld [vmem:[%s451_s7 + $0x10] sm:$0xff] }
  0x16   :  { %224 = vmatmul.msk.f32.vlgmr.msra.gmra.mxu1 %vm118_vm1, %v89_v4  ;;  %204 = vmatpush.msra.mxu3 %v184_v9  ;;  %v233_v11 = vld [vmem:[%s448_s4] ss:$0 sm:$0xff]  ;;  %v182_v17 = vld [vmem:[%s451_s7 + $0x8] sm:$0xff] }
  0x17   :  { %173 = vmatpush.msra.mxu2 %v150_v6  ;;  %v181_v18 = vld [vmem:[%s451_s7] sm:$0xff] }
  0x18   :  { %205 = vmatpush.msra.mxu3 %v183_v16  ;;  %v234_v19 = vld [vmem:[%s450_s6] ss:$0 sm:$0xff] }
  0x19   :  { %174 = vmatpush.msra.mxu2 %v149_v7  ;;  %v235_v23 = vld [vmem:[%s452_s8] ss:$0 sm:$0xff] }
  0x1a   :  { %206 = vmatpush.msra.mxu3 %v182_v17 }
  0x1b   :  { %175 = vmatpush.msra.mxu2 %v148_v8 }
  0x1c   :  { %207 = vmatpush.msra.mxu3 %v181_v18 }
  0x91   :  { %v115_v10 = vpop.f32.mrf.mxu0 }
  0x93   :  { %v139_v12 = vpop.f32.mrf.mxu1 }
  0x94   :  { %v140_v13 = vadd.f32 %v139_v12, %v115_v10 }
  0x96   :  { %v146_v14 = vadd.f32 %v233_v11, %v140_v13 }
  0x98   :  { %v147_v15 = vmax.f32 %v146_v14, 0.0 }
  0x9a   :  { %225 = vmatmul.msk.f32.vlgmr.msra.gmra.mxu2 %vm156_vm2, %v147_v15 }
 0x11d   :  { %v177_v20 = vpop.f32.mrf.mxu2 }
 0x11e   :  { %v178_v21 = vadd.f32 %v234_v19, %v177_v20 }
 0x120   :  { %v180_v22 = vmax.f32 %v178_v21, 0.0 }
 0x122   :  { %226 = vmatmul.msk.f32.vlgmr.msra.gmra.mxu3 %vm156_vm2, %v180_v22 }
 0x1a5   :  { %v209_v24 = vpop.f32.mrf.mxu3 }
 0x1a6   :  { %v210_v25 = vadd.f32 %v235_v23, %v209_v24 }
 0x1a8   :  { %236 = vtanh.f32 %v210_v25 }
 0x1ae   :  { %v237_v26 = vpop.eup %236 }
 0x1af   :  { %v213_v27 = vmul.f32 2.0, %v237_v26 }
 0x1b1   :  { %215 = vst.msk [vmem:[%s453_s9] sm:$0xff] %vm214_vm3, %v213_v27 }
 0x1b2   :  { %220 = vsyncpa [#allocation3], 1 }
 0x1b3   :  { %221 = vsyncpa [#allocation5], 1 }
 0x1b4   :  { %222 = vsyncpa [#allocation8], 1 }

</bundles_post_ra>
